<compile_context>
chip_gen: v5e
topology: v5e:2x2
jax: 0.10.0
libtpu: 0.0.40
codegen_flags: <defaults>
</compile_context>

<pallas_src>
import jax
import jax.numpy as jnp
from jax.experimental import pallas as pl
from jax.experimental.pallas import tpu as pltpu

_MIB = 1024 * 1024


def _round_up(x, m):
    return ((x + m - 1) // m) * m


def _sublane_multiple(dtype):
    # Sub-32-bit dtypes pack along sublanes: f32 -> 8, bf16 -> 16, int8/fp8 -> 32.
    return max(8, 32 // jnp.dtype(dtype).itemsize)


def _split_evenly(dim, tile_max, align):
    """Split round_up(dim, align) into equal chunks <= tile_max (chunks multiple of align).

    Returns (tile, padded_dim). Even splitting bounds zero-pad waste to < align
    per chunk (vs. up to a whole tile with a fixed max tile size)."""
    dim_r = _round_up(max(int(dim), 1), align)
    tile_max = max(align, (int(tile_max) // align) * align)  # round max DOWN to align
    n = pl.cdiv(dim_r, tile_max)
    tile = _round_up(pl.cdiv(dim_r, n), align)
    return tile, n * tile


def _split_prefer_256(dim, tile_max):
    """Lane-dim split preferring MXU-friendly 256-multiples when they add no padding."""
    t128, p128 = _split_evenly(dim, tile_max, 128)
    if tile_max >= 256 and _round_up(dim, 128) >= 256:
        t256, p256 = _split_evenly(dim, tile_max, 256)
        if p256 <= p128:
            return t256, p256
    return t128, p128


def _tpu_info():
    try:
        return pltpu.get_tpu_info()
    except Exception:  # interpret mode / very old runtime
        return None


def _vmem_capacity_bytes(info):
    cap = getattr(info, "vmem_capacity_bytes", None) if info is not None else None
    # Unknown -> assume the smallest-VMEM generation (v7x: 64 MiB per TC).
    return int(cap) if cap else 64 * _MIB


def _num_tensorcores(info):
    if info is None:
        return 1
    for attr in ("num_tensorcores", "tensorcores_per_chip"):
        v = getattr(info, attr, None)
        if isinstance(v, int) and v > 0:
            return min(v, 2)
    # Heuristic: the 64 MiB-per-core VMEM generation (v7x) is the 2-TC one.
    return 2 if _vmem_capacity_bytes(info) <= 64 * _MIB else 1


def _matmul_kernel_inplace(a_ref, b_ref, o_ref):
    # f32 output: the output tile stays resident across the K axis (same (i, j)
    # block index), so accumulate straight into it — no scratch, no final copy.
    @pl.when(pl.program_id(2) == 0)
    def _():
        o_ref[...] = jnp.zeros_like(o_ref)

    o_ref[...] += jnp.dot(a_ref[...], b_ref[...], preferred_element_type=jnp.float32)


def _matmul_kernel_acc(a_ref, b_ref, o_ref, acc_ref):
    # Narrow output dtype (e.g. bf16): accumulate in f32 scratch, cast once.
    @pl.when(pl.program_id(2) == 0)
    def _():
        acc_ref[...] = jnp.zeros_like(acc_ref)

    acc_ref[...] += jnp.dot(a_ref[...], b_ref[...], preferred_element_type=jnp.float32)

    @pl.when(pl.program_id(2) == pl.num_programs(2) - 1)
    def _():
        o_ref[...] = acc_ref[...].astype(o_ref.dtype)


def matrix_multiply(a, b, *, tm=None, tn=None, tk=None, buffer_count=2,
                    allow_bf16_inputs=False):
    """Pallas equivalent of MatrixMultiply.forward(a, b) == a @ b (2-D)."""
    assert a.ndim == 2 and b.ndim == 2, "2-D matmul only"
    M, K = a.shape
    K2, N = b.shape
    assert K == K2, "inner dimensions must match"

    out_dtype = jnp.dtype(jnp.promote_types(a.dtype, b.dtype))

    # TODO(synk): exact integer-matmul semantics are not preserved — integer inputs
    # go through the f32 MXU path (exact only up to ~2**24 magnitudes), and v7x has
    # no integer MXU mode at all.
    if not jnp.issubdtype(out_dtype, jnp.floating):
        a = a.astype(jnp.float32)
        b = b.astype(jnp.float32)

    # Opt-in throughput lever: bf16 MXU inputs with f32 accumulation (changes numerics).
    if allow_bf16_inputs and jnp.issubdtype(out_dtype, jnp.floating):
        if jnp.dtype(a.dtype) == jnp.dtype(jnp.float32):
            a = a.astype(jnp.bfloat16)
        if jnp.dtype(b.dtype) == jnp.dtype(jnp.float32):
            b = b.astype(jnp.bfloat16)

    a_item = jnp.dtype(a.dtype).itemsize
    b_item = jnp.dtype(b.dtype).itemsize
    o_item = out_dtype.itemsize
    max_item = max(a_item, b_item)

    info = _tpu_info()
    num_cores = _num_tensorcores(info)
    # Generation-aware ceiling: ~3/4 of physical VMEM (96 MiB on 128 MiB chips,
    # 48 MiB on v7x's 64 MiB) leaves room for Mosaic's own scratch.
    hard_cap = (_vmem_capacity_bytes(info) * 3) // 4

    # ---- Defaults sized for the HBM roofline (intensity ~ 2 / ((1/tm + 1/tn) * item)).
    if tm is None:
        tm = 512
    if tn is None:
        tn = 1024
    if tk is None:
        tk = 1024 if max_item <= 2 else 512

    sub_m = max(_sublane_multiple(a.dtype), _sublane_multiple(out_dtype))
    use_inplace = out_dtype == jnp.dtype(jnp.float32)
    nbuf = max(2, int(buffer_count))

    # ---- Shrink requested tile maxima until the pipelined working set fits the cap.
    def _ws(tm_, tn_, tk_):
        return (nbuf * tm_ * tk_ * a_item + nbuf * tk_ * tn_ * b_item
                + 2 * tm_ * tn_ * o_item + (0 if use_inplace else tm_ * tn_ * 4))

    budget = hard_cap - 8 * _MIB
    while _ws(tm, tn, tk) > budget:
        if tk >= tn and tk >= tm and tk > 256:
            tk //= 2
        elif tn >= tm and tn > 256:
            tn //= 2
        elif tm > 2 * sub_m:
            tm //= 2
        else:
            break

    # ---- Tile sizing: split each dim evenly; keep (sub_m, 128) legality,
    #      prefer 256-multiples on the lane/contraction dims for the 256x256 MXU.
    tm, Mp = _split_evenly(M, tm, sub_m)
    tk, Kp = _split_prefer_256(K, tk)
    tn, Np = _split_prefer_256(N, tn)

    # ---- Megacore: only split when the chip actually has >1 TensorCore.
    #      (On single-TC v5e/v6e a split just doubles grid overhead and B traffic.)
    if num_cores > 1:
        while (Mp // tm) * (Np // tn) < num_cores:
            if tm % (2 * sub_m) == 0 and tm // 2 >= 256:
                tm //= 2
            elif tn % 256 == 0 and tn // 2 >= 256:
                tn //= 2
            elif tm % (2 * sub_m) == 0:
                tm //= 2
            elif tn % 256 == 0:
                tn //= 2
            else:
                break

    # ---- Zero-pad only dims that are truly ragged (jnp.pad is a full extra HBM
    #      pass; the even split above keeps it rare and bounded).
    if (Mp, Kp) != (M, K):
        a = jnp.pad(a, ((0, Mp - M), (0, Kp - K)))
    if (Kp, Np) != (K, N):
        b = jnp.pad(b, ((0, Kp - K), (0, Np - N)))

    kernel = _matmul_kernel_inplace if use_inplace else _matmul_kernel_acc
    scratch_shapes = [] if use_inplace else [pltpu.VMEM((tm, tn), jnp.float32)]

    working_bytes = _ws(tm, tn, tk)
    vmem_limit = int(min(max(working_bytes + 8 * _MIB, 32 * _MIB), hard_cap))

    spec_kwargs = {}
    if nbuf > 2:
        # Deepen A and B together: both tiles change every K step, so deepening
        # only one leaves the other's DMA equally exposed.
        spec_kwargs["pipeline_mode"] = pl.Buffered(nbuf)

    cost = pl.CostEstimate(
        flops=2 * M * N * K,
        transcendentals=0,
        bytes_accessed=M * K * a_item + K * N * b_item + M * N * o_item,
    )

    out = pl.pallas_call(
        kernel,
        out_shape=jax.ShapeDtypeStruct((Mp, Np), out_dtype),
        grid_spec=pltpu.PrefetchScalarGridSpec(
            num_scalar_prefetch=0,
            grid=(Mp // tm, Np // tn, Kp // tk),
            in_specs=[
                pl.BlockSpec((tm, tk), lambda i, j, k: (i, k), **spec_kwargs),
                pl.BlockSpec((tk, tn), lambda i, j, k: (k, j), **spec_kwargs),
            ],
            out_specs=pl.BlockSpec((tm, tn), lambda i, j, k: (i, j)),
            scratch_shapes=scratch_shapes,
        ),
        compiler_params=pltpu.CompilerParams(
            dimension_semantics=("parallel", "parallel", "arbitrary"),
            vmem_limit_bytes=vmem_limit,
        ),
        cost_estimate=cost,
    )(a, b)

    if (Mp, Np) != (M, N):
        out = out[:M, :N]
    return out


if __name__ == "__main__":
    # Deterministic, small, deliberately NOT tile-multiples to exercise the
    # even-split tile clamping / (minimal) padding / megacore-gating paths.
    key = jax.random.PRNGKey(0)
    ka, kb = jax.random.split(key)
    M, K, N = 192, 384, 256

    # f32 path (in-place resident f32 output accumulator).
    a = jax.random.normal(ka, (M, K), dtype=jnp.float32)
    b = jax.random.normal(kb, (K, N), dtype=jnp.float32)
    out = jax.block_until_ready(matrix_multiply(a, b))
    ref = a @ b
    assert out.shape == (M, N)
    assert jnp.allclose(out, ref, atol=1e-3, rtol=1e-3)

    # bf16 path (f32 scratch accumulator + final cast).
    a16 = a.astype(jnp.bfloat16)
    b16 = b.astype(jnp.bfloat16)
    out16 = jax.block_until_ready(matrix_multiply(a16, b16))
    ref16 = (a16.astype(jnp.float32) @ b16.astype(jnp.float32))
    assert out16.dtype == jnp.bfloat16 and out16.shape == (M, N)
    assert jnp.allclose(out16.astype(jnp.float32), ref16, atol=2e-1, rtol=2e-2)

    # TODO(synk): the reference PyTorch module's __init__/forward are empty (pass);
    # semantics assumed from the class name as out = args[0] @ args[1].
    print("KERNEL_OK")
</pallas_src>

<mosaic_0001>
module attributes {stable_mosaic.version = 11 : i64} {
  func.func @_matmul_kernel_inplace(%arg0: i32, %arg1: i32, %arg2: i32, %arg3: memref<192x384xf32, #tpu.memory_space<vmem>>, %arg4: memref<384x256xf32, #tpu.memory_space<vmem>>, %arg5: memref<192x256xf32, #tpu.memory_space<vmem>>) attributes {dimension_semantics = [#tpu.dimension_semantics<parallel>, #tpu.dimension_semantics<parallel>, #tpu.dimension_semantics<arbitrary>], iteration_bounds = array<i64: 1, 1, 1>, scalar_prefetch = 0 : i64, scratch_operands = 0 : i64, tpu.core_type = #tpu.core_type<tc>, window_params = [{transform_indices = @transform_0, window_bounds = array<i64: 192, 384>}, {transform_indices = @transform_1, window_bounds = array<i64: 384, 256>}, {transform_indices = @transform_2, window_bounds = array<i64: 192, 256>}]} {
    %c0_i32 = arith.constant 0 : i32
    %0 = arith.cmpi eq, %arg2, %c0_i32 : i32
    %1 = arith.extui %0 : i1 to i32
    %c0_i32_0 = arith.constant 0 : i32
    %2 = arith.cmpi ne, %1, %c0_i32_0 : i32
    scf.if %2 {
      %cst_8 = arith.constant 0.000000e+00 : f32
      %9 = vector.broadcast %cst_8 : f32 to vector<192x256xf32>
      %c0_9 = arith.constant 0 : index
      %c0_10 = arith.constant 0 : index
      %10 = vector.load %arg5[%c0_9, %c0_10] : memref<192x256xf32, #tpu.memory_space<vmem>>, vector<192x256xf32>
      tpu.vector_store %arg5[%c0_9, %c0_10], %9 {strides = array<i32>} : memref<192x256xf32, #tpu.memory_space<vmem>>, vector<192x256xf32>,
    } else {
    }
    %c0 = arith.constant 0 : index
    %c0_1 = arith.constant 0 : index
    %3 = vector.load %arg5[%c0, %c0_1] : memref<192x256xf32, #tpu.memory_space<vmem>>, vector<192x256xf32>
    %c0_2 = arith.constant 0 : index
    %c0_3 = arith.constant 0 : index
    %4 = vector.load %arg3[%c0_2, %c0_3] : memref<192x384xf32, #tpu.memory_space<vmem>>, vector<192x384xf32>
    %c0_4 = arith.constant 0 : index
    %c0_5 = arith.constant 0 : index
    %5 = vector.load %arg4[%c0_4, %c0_5] : memref<384x256xf32, #tpu.memory_space<vmem>>, vector<384x256xf32>
    %cst = arith.constant dense<0.000000e+00> : vector<192x256xf32>
    %6 = tpu.matmul %4, %5, %cst {dimension_numbers = #tpu.dot_dimension_numbers<[1], [0], [0], [1], [0, 0, 1, 1], [], []>} : vector<192x384xf32>, vector<384x256xf32>, vector<192x256xf32> -> vector<192x256xf32>
    %7 = arith.addf %3, %6 : vector<192x256xf32>
    %c0_6 = arith.constant 0 : index
    %c0_7 = arith.constant 0 : index
    %8 = vector.load %arg5[%c0_6, %c0_7] : memref<192x256xf32, #tpu.memory_space<vmem>>, vector<192x256xf32>
    tpu.vector_store %arg5[%c0_6, %c0_7], %7 {strides = array<i32>} : memref<192x256xf32, #tpu.memory_space<vmem>>, vector<192x256xf32>,
    return
  }
  func.func @transform_0(%arg0: i32, %arg1: i32, %arg2: i32) -> (i32, i32) {
    %c0_i32 = arith.constant 0 : i32
    return %arg0, %arg2 : i32, i32
  }
  func.func @transform_1(%arg0: i32, %arg1: i32, %arg2: i32) -> (i32, i32) {
    %c0_i32 = arith.constant 0 : i32
    return %arg2, %arg1 : i32, i32
  }
  func.func @transform_2(%arg0: i32, %arg1: i32, %arg2: i32) -> (i32, i32) {
    %c0_i32 = arith.constant 0 : i32
    return %arg0, %arg1 : i32, i32
  }
}

</mosaic_0001>

<bundles_post_ra>
// kernel: tpu_custom_call.1
= control target key start
LH: loop header
LB: loop body
LE: loop exit
PB: predicated region body
PF: predicated region fallthrough
CT: control target
= control target key end

     0   :  { %7 = vsyncpa [#allocation3], 0  ;;  %s1417_s0 = inlined_call_operand.hbm [shape: f32[192,384], index: 0, kind: input, shape index: {}]   ;;  %s1418_s1 = inlined_call_operand.hbm [shape: f32[384,256], index: 1, kind: input, shape index: {}]   ;;  %s1419_s2 = inlined_call_operand.hbm [shape: f32[192,256], index: 2, kind: output, shape index: {}]  }
   0x1   :  { %8 = vsyncpa [#allocation6], 0 }
   0x2   :  { %9 = vsyncpa [#allocation4], 0  ;;  %s14_s11 = sshll.u32 %s1417_s0, 4  ;;  %s1080_s12 = smov [#allocation2]   ;;  %s15_s11 = int_to_ptr.hbm [resolvable:$true] %s14_s11 }
   0x3   :  { %s16_s13 = sshll.u32 %s1080_s12, 4  ;;  %s27_s16 = sshll.u32 %s1418_s1, 4  ;;  %s17_s13 = int_to_ptr.vmem [resolvable:$true] %s16_s13  ;;  %s28_s16 = int_to_ptr.hbm [resolvable:$true] %s27_s16 }
   0x4   :  { %s1081_s17 = smov 384   ;;  %s1082_s18 = smov 24  }
   0x5   :  { %22 = dma.hbm_to_vmem [thread:$0]  %s15_s11, 9216, %s17_s13, [#allocation3], %s1081_s17, %s1081_s17, %s1082_s18  }
   0x6   :  { %s1083_s19 = smov [#allocation5]   ;;  %s1084_s21 = smov 256  }
   0x7   :  { %s29_s20 = sshll.u32 %s1083_s19, 4  ;;  %s1085_s22 = smov 16   ;;  %s30_s20 = int_to_ptr.vmem [resolvable:$true] %s29_s20 }
   0x8   :  { %35 = dma.hbm_to_vmem [thread:$0]  %s28_s16, 12288, %s30_s20, [#allocation6], %s1084_s21, %s1084_s21, %s1085_s22  }
   0x9   :  { %1074 = dma.done.wait [#allocation3], 9216  }
   0xa   :  { %1075 = vsyncadd [#allocation3], 4294958080 }
   0xb   :  { %1076 = dma.done.wait [#allocation6], 12288  }
   0xc   :  { %1077 = vsyncadd [#allocation6], 4294955008  ;;  %v246_v0 = vld [vmem:[#allocation5 + $0xf0] sm:$0xff]  ;;  %v244_v2 = vld [vmem:[#allocation5 + $0xe0] sm:$0xff]  ;;  %s1086_s0 = smov [#allocation7]   ;;  %s948_s25 = sshll.u32 %s1419_s2, 4  ;;  %s949_s25 = int_to_ptr.hbm [resolvable:$true] %s948_s25 }
   0xd   :  { %v278_v1 = vld [vmem:[#allocation5 + $0x1f0] sm:$0xff]  ;;  %962 = vmatpush.msra.mxu2 %v246_v0  ;;  %v276_v3 = vld [vmem:[#allocation5 + $0x1e0] sm:$0xff]  ;;  %312 = vmatpush.msra.mxu0 %v246_v0  ;;  %v1113_v33 = vld [vmem:[#allocation2 + $0x128] sm:$0xff]  ;;  %s946_s1 = sshll.u32 %s1086_s0, 4  ;;  %s947_s1 = int_to_ptr.vmem [resolvable:$true] %s946_s1 }
   0xe   :  { %978 = vmatpush.msra.mxu3 %v278_v1  ;;  %v242_v4 = vld [vmem:[#allocation5 + $0xd0] sm:$0xff]  ;;  %401 = vmatpush.msra.mxu1 %v278_v1  ;;  %v240_v6 = vld [vmem:[#allocation5 + $0xc0] sm:$0xff]  ;;  %v247_v34 = vld [vmem:[#allocation5 + $0xf8] sm:$0xff] }
   0xf   :  { %v274_v5 = vld [vmem:[#allocation5 + $0x1d0] sm:$0xff]  ;;  %963 = vmatpush.msra.mxu2 %v244_v2  ;;  %v272_v7 = vld [vmem:[#allocation5 + $0x1c0] sm:$0xff]  ;;  %313 = vmatpush.msra.mxu0 %v244_v2  ;;  %v1119_v37 = vld [vmem:[#allocation2 + $0x8] sm:$0xff] }
  0x10   :  { %979 = vmatpush.msra.mxu3 %v276_v3  ;;  %402 = vmatpush.msra.mxu1 %v276_v3  ;;  %v238_v8 = vld [vmem:[#allocation5 + $0xb0] sm:$0xff]  ;;  %v236_v10 = vld [vmem:[#allocation5 + $0xa0] sm:$0xff]  ;;  %v245_v38 = vld [vmem:[#allocation5 + $0xe8] sm:$0xff] }
  0x11   :  { %964 = vmatpush.msra.mxu2 %v242_v4  ;;  %v270_v9 = vld [vmem:[#allocation5 + $0x1b0] sm:$0xff]  ;;  %314 = vmatpush.msra.mxu0 %v242_v4  ;;  %v268_v11 = vld [vmem:[#allocation5 + $0x1a0] sm:$0xff]  ;;  %v279_v39 = vld [vmem:[#allocation5 + $0x1f8] sm:$0xff] }
  0x12   :  { %980 = vmatpush.msra.mxu3 %v274_v5  ;;  %403 = vmatpush.msra.mxu1 %v274_v5  ;;  %v234_v12 = vld [vmem:[#allocation5 + $0x90] sm:$0xff]  ;;  %v232_v14 = vld [vmem:[#allocation5 + $0x80] sm:$0xff]  ;;  %v311_v41 = vld [vmem:[#allocation5 + $0x2f8] sm:$0xff] }
  0x13   :  { %965 = vmatpush.msra.mxu2 %v240_v6  ;;  %315 = vmatpush.msra.mxu0 %v240_v6  ;;  %v266_v13 = vld [vmem:[#allocation5 + $0x190] sm:$0xff]  ;;  %v264_v15 = vld [vmem:[#allocation5 + $0x180] sm:$0xff]  ;;  %v243_v42 = vld [vmem:[#allocation5 + $0xd8] sm:$0xff] }
  0x14   :  { %981 = vmatpush.msra.mxu3 %v272_v7  ;;  %404 = vmatpush.msra.mxu1 %v272_v7  ;;  %v230_v16 = vld [vmem:[#allocation5 + $0x70] sm:$0xff]  ;;  %v228_v18 = vld [vmem:[#allocation5 + $0x60] sm:$0xff]  ;;  %v277_v43 = vld [vmem:[#allocation5 + $0x1e8] sm:$0xff] }
  0x15   :  { %966 = vmatpush.msra.mxu2 %v238_v8  ;;  %316 = vmatpush.msra.mxu0 %v238_v8  ;;  %v262_v17 = vld [vmem:[#allocation5 + $0x170] sm:$0xff]  ;;  %v260_v19 = vld [vmem:[#allocation5 + $0x160] sm:$0xff]  ;;  %v309_v45 = vld [vmem:[#allocation5 + $0x2e8] sm:$0xff] }
  0x16   :  { %982 = vmatpush.msra.mxu3 %v270_v9  ;;  %405 = vmatpush.msra.mxu1 %v270_v9  ;;  %v226_v20 = vld [vmem:[#allocation5 + $0x50] sm:$0xff]  ;;  %v224_v22 = vld [vmem:[#allocation5 + $0x40] sm:$0xff]  ;;  %v1123_v46 = vld [vmem:[#allocation2 + $0x138] sm:$0xff] }
  0x17   :  { %967 = vmatpush.msra.mxu2 %v236_v10  ;;  %317 = vmatpush.msra.mxu0 %v236_v10  ;;  %v258_v21 = vld [vmem:[#allocation5 + $0x150] sm:$0xff]  ;;  %v256_v23 = vld [vmem:[#allocation5 + $0x140] sm:$0xff]  ;;  %v241_v48 = vld [vmem:[#allocation5 + $0xc8] sm:$0xff] }
  0x18   :  { %983 = vmatpush.msra.mxu3 %v268_v11  ;;  %406 = vmatpush.msra.mxu1 %v268_v11  ;;  %v222_v24 = vld [vmem:[#allocation5 + $0x30] sm:$0xff]  ;;  %v220_v26 = vld [vmem:[#allocation5 + $0x20] sm:$0xff]  ;;  %v275_v49 = vld [vmem:[#allocation5 + $0x1d8] sm:$0xff] }
  0x19   :  { %968 = vmatpush.msra.mxu2 %v234_v12  ;;  %318 = vmatpush.msra.mxu0 %v234_v12  ;;  %v254_v25 = vld [vmem:[#allocation5 + $0x130] sm:$0xff]  ;;  %v252_v27 = vld [vmem:[#allocation5 + $0x120] sm:$0xff]  ;;  %v307_v51 = vld [vmem:[#allocation5 + $0x2d8] sm:$0xff] }
  0x1a   :  { %984 = vmatpush.msra.mxu3 %v266_v13  ;;  %407 = vmatpush.msra.mxu1 %v266_v13  ;;  %v218_v28 = vld [vmem:[#allocation5 + $0x10] sm:$0xff]  ;;  %v216_v30 = vld [vmem:[#allocation5] sm:$0xff]  ;;  %v1129_v52 = vld [vmem:[#allocation2 + $0x18] sm:$0xff] }
  0x1b   :  { %969 = vmatpush.msra.mxu2 %v232_v14  ;;  %319 = vmatpush.msra.mxu0 %v232_v14  ;;  %v250_v29 = vld [vmem:[#allocation5 + $0x110] sm:$0xff]  ;;  %v248_v31 = vld [vmem:[#allocation5 + $0x100] sm:$0xff]  ;;  %v239_v54 = vld [vmem:[#allocation5 + $0xb8] sm:$0xff] }
  0x1c   :  { %985 = vmatpush.msra.mxu3 %v264_v15  ;;  %408 = vmatpush.msra.mxu1 %v264_v15  ;;  %v1111_v32 = vld [vmem:[#allocation2 + $0x120] sm:$0xff]  ;;  %v310_v35 = vld [vmem:[#allocation5 + $0x2f0] sm:$0xff]  ;;  %v273_v55 = vld [vmem:[#allocation5 + $0x1c8] sm:$0xff] }
  0x1d   :  { %970 = vmatpush.msra.mxu2 %v230_v16  ;;  %320 = vmatpush.msra.mxu0 %v230_v16  ;;  %v1117_v36 = vld [vmem:[#allocation2] sm:$0xff]  ;;  %v306_v44 = vld [vmem:[#allocation5 + $0x2d0] sm:$0xff]  ;;  %v305_v57 = vld [vmem:[#allocation5 + $0x2c8] sm:$0xff] }
  0x1e   :  { %986 = vmatpush.msra.mxu3 %v262_v17  ;;  %409 = vmatpush.msra.mxu1 %v262_v17  ;;  %v308_v40 = vld [vmem:[#allocation5 + $0x2e0] sm:$0xff]  ;;  %v302_v56 = vld [vmem:[#allocation5 + $0x2b0] sm:$0xff]  ;;  %v237_v58 = vld [vmem:[#allocation5 + $0xa8] sm:$0xff] }
  0x1f   :  { %971 = vmatpush.msra.mxu2 %v228_v18  ;;  %321 = vmatpush.msra.mxu0 %v228_v18  ;;  %v1125_v47 = vld [vmem:[#allocation2 + $0x140] sm:$0xff]  ;;  %v271_v59 = vld [vmem:[#allocation5 + $0x1b8] sm:$0xff]  ;;  %v1135_v62 = vld [vmem:[#allocation2 + $0x150] sm:$0xff] }
  0x20   :  { %987 = vmatpush.msra.mxu3 %v260_v19  ;;  %410 = vmatpush.msra.mxu1 %v260_v19  ;;  %v304_v50 = vld [vmem:[#allocation5 + $0x2c0] sm:$0xff]  ;;  %v303_v61 = vld [vmem:[#allocation5 + $0x2b8] sm:$0xff]  ;;  %v269_v1 = vld [vmem:[#allocation5 + $0x1a8] sm:$0xff] }
  0x21   :  { %972 = vmatpush.msra.mxu2 %v226_v20  ;;  %322 = vmatpush.msra.mxu0 %v226_v20  ;;  %v1131_v53 = vld [vmem:[#allocation2 + $0x20] sm:$0xff]  ;;  %v1137_v63 = vld [vmem:[#allocation2 + $0x158] sm:$0xff]  ;;  %v298_v2 = vld [vmem:[#allocation5 + $0x290] sm:$0xff] }
  0x22   :  { %988 = vmatpush.msra.mxu3 %v258_v21  ;;  %411 = vmatpush.msra.mxu1 %v258_v21  ;;  %v300_v60 = vld [vmem:[#allocation5 + $0x2a0] sm:$0xff]  ;;  %v235_v0 = vld [vmem:[#allocation5 + $0x98] sm:$0xff]  ;;  %v301_v3 = vld [vmem:[#allocation5 + $0x2a8] sm:$0xff] }
  0x23   :  { %973 = vmatpush.msra.mxu2 %v224_v22  ;;  %323 = vmatpush.msra.mxu0 %v224_v22  ;;  %v1141_v4 = vld [vmem:[#allocation2 + $0x30] sm:$0xff]  ;;  %v1143_v5 = vld [vmem:[#allocation2 + $0x38] sm:$0xff]  ;;  %v233_v6 = vld [vmem:[#allocation5 + $0x88] sm:$0xff] }
  0x24   :  { %989 = vmatpush.msra.mxu3 %v256_v23  ;;  %412 = vmatpush.msra.mxu1 %v256_v23  ;;  %v267_v7 = vld [vmem:[#allocation5 + $0x198] sm:$0xff]  ;;  %v296_v8 = vld [vmem:[#allocation5 + $0x280] sm:$0xff]  ;;  %v265_v11 = vld [vmem:[#allocation5 + $0x188] sm:$0xff] }
  0x25   :  { %974 = vmatpush.msra.mxu2 %v222_v24  ;;  %324 = vmatpush.msra.mxu0 %v222_v24  ;;  %v299_v9 = vld [vmem:[#allocation5 + $0x298] sm:$0xff]  ;;  %v294_v12 = vld [vmem:[#allocation5 + $0x270] sm:$0xff]  ;;  %v297_v13 = vld [vmem:[#allocation5 + $0x288] sm:$0xff] }
  0x26   :  { %990 = vmatpush.msra.mxu3 %v254_v25  ;;  %413 = vmatpush.msra.mxu1 %v254_v25  ;;  %v231_v10 = vld [vmem:[#allocation5 + $0x78] sm:$0xff]  ;;  %v1147_v14 = vld [vmem:[#allocation2 + $0x168] sm:$0xff]  ;;  %v1149_v15 = vld [vmem:[#allocation2 + $0x170] sm:$0xff] }
  0x27   :  { %975 = vmatpush.msra.mxu2 %v220_v26  ;;  %325 = vmatpush.msra.mxu0 %v220_v26  ;;  %v229_v16 = vld [vmem:[#allocation5 + $0x68] sm:$0xff]  ;;  %v263_v17 = vld [vmem:[#allocation5 + $0x178] sm:$0xff]  ;;  %v1155_v19 = vld [vmem:[#allocation2 + $0x50] sm:$0xff] }
  0x28   :  { %991 = vmatpush.msra.mxu3 %v252_v27  ;;  %414 = vmatpush.msra.mxu1 %v252_v27  ;;  %v1151_v18 = vld [vmem:[#allocation2 + $0x48] sm:$0xff]  ;;  %v292_v20 = vld [vmem:[#allocation5 + $0x260] sm:$0xff]  ;;  %v295_v21 = vld [vmem:[#allocation5 + $0x278] sm:$0xff] }
  0x29   :  { %976 = vmatpush.msra.mxu2 %v218_v28  ;;  %326 = vmatpush.msra.mxu0 %v218_v28  ;;  %v227_v22 = vld [vmem:[#allocation5 + $0x58] sm:$0xff]  ;;  %v261_v23 = vld [vmem:[#allocation5 + $0x168] sm:$0xff]  ;;  %v290_v24 = vld [vmem:[#allocation5 + $0x250] sm:$0xff] }
  0x2a   :  { %992 = vmatpush.msra.mxu3 %v250_v29  ;;  %415 = vmatpush.msra.mxu1 %v250_v29  ;;  %v293_v25 = vld [vmem:[#allocation5 + $0x268] sm:$0xff]  ;;  %v1159_v26 = vld [vmem:[#allocation2 + $0x180] sm:$0xff] }
  0x2b   :  { %977 = vmatpush.msra.mxu2 %v216_v30  ;;  %327 = vmatpush.msra.mxu0 %v216_v30  ;;  %v1161_v27 = vld [vmem:[#allocation2 + $0x188] sm:$0xff]  ;;  %v1163_v28 = vld [vmem:[#allocation2 + $0x60] sm:$0xff] }
  0x2c   :  { %993 = vmatpush.msra.mxu3 %v248_v31  ;;  %364 = vmatmul.f32.vlgmr.msra.gmra.mxu2 %v1111_v32  ;;  %v1165_v29 = vld [vmem:[#allocation2 + $0x68] sm:$0xff] }
  0x2d   :  { %453 = vmatmul.f32.vlgmr.msra.gmra.mxu3 %v1113_v33  ;;  %490 = vmatpush.msrb.mxu2 %v310_v35  ;;  %v225_v30 = vld [vmem:[#allocation5 + $0x48] sm:$0xff]  ;;  %v291_v35 = vld [vmem:[#allocation5 + $0x258] sm:$0xff] }
  0x2e   :  { %579 = vmatpush.msrb.mxu3 %v247_v34  ;;  %416 = vmatpush.msra.mxu1 %v248_v31  ;;  %v259_v31 = vld [vmem:[#allocation5 + $0x158] sm:$0xff]  ;;  %v288_v34 = vld [vmem:[#allocation5 + $0x240] sm:$0xff] }
  0x2f   :  { %328 = vmatmul.f32.vlgmr.msra.gmra.mxu0 %v1117_v36  ;;  %417 = vmatmul.f32.vlgmr.msra.gmra.mxu1 %v1119_v37 }
  0x30   :  { %580 = vmatpush.msrb.mxu3 %v245_v38  ;;  %668 = vmatpush.msrb.mxu0 %v279_v39  ;;  %v1171_v38 = vld [vmem:[#allocation2 + $0x198] sm:$0xff]  ;;  %v1173_v39 = vld [vmem:[#allocation2 + $0x1a0] sm:$0xff] }
  0x31   :  { %491 = vmatpush.msrb.mxu2 %v308_v40  ;;  %757 = vmatpush.msrb.mxu1 %v311_v41  ;;  %v1175_v40 = vld [vmem:[#allocation2 + $0x78] sm:$0xff]  ;;  %v1177_v41 = vld [vmem:[#allocation2 + $0x80] sm:$0xff] }
  0x32   :  { %581 = vmatpush.msrb.mxu3 %v243_v42  ;;  %669 = vmatpush.msrb.mxu0 %v277_v43  ;;  %v223_v42 = vld [vmem:[#allocation5 + $0x38] sm:$0xff]  ;;  %v257_v43 = vld [vmem:[#allocation5 + $0x148] sm:$0xff] }
  0x33   :  { %492 = vmatpush.msrb.mxu2 %v306_v44  ;;  %758 = vmatpush.msrb.mxu1 %v309_v45  ;;  %v286_v44 = vld [vmem:[#allocation5 + $0x230] sm:$0xff]  ;;  %v289_v45 = vld [vmem:[#allocation5 + $0x248] sm:$0xff] }
  0x34   :  { %367 = vmatmul.f32.gmra.mxu2 %v1123_v46  ;;  %582 = vmatpush.msrb.mxu3 %v241_v48  ;;  %v221_v48 = vld [vmem:[#allocation5 + $0x28] sm:$0xff] }
  0x35   :  { %456 = vmatmul.f32.gmra.mxu3 %v1125_v47  ;;  %670 = vmatpush.msrb.mxu0 %v275_v49  ;;  %v255_v49 = vld [vmem:[#allocation5 + $0x138] sm:$0xff] }
  0x36   :  { %493 = vmatpush.msrb.mxu2 %v304_v50  ;;  %759 = vmatpush.msrb.mxu1 %v307_v51  ;;  %v1183_v50 = vld [vmem:[#allocation2 + $0x1b0] sm:$0xff]  ;;  %v1185_v51 = vld [vmem:[#allocation2 + $0x1b8] sm:$0xff] }
  0x37   :  { %331 = vmatmul.f32.gmra.mxu0 %v1129_v52  ;;  %420 = vmatmul.f32.gmra.mxu1 %v1131_v53 }
  0x38   :  { %583 = vmatpush.msrb.mxu3 %v239_v54  ;;  %671 = vmatpush.msrb.mxu0 %v273_v55  ;;  %v1187_v54 = vld [vmem:[#allocation2 + $0x90] sm:$0xff]  ;;  %v1189_v55 = vld [vmem:[#allocation2 + $0x98] sm:$0xff] }
  0x39   :  { %494 = vmatpush.msrb.mxu2 %v302_v56  ;;  %760 = vmatpush.msrb.mxu1 %v305_v57  ;;  %v284_v56 = vld [vmem:[#allocation5 + $0x220] sm:$0xff]  ;;  %v287_v57 = vld [vmem:[#allocation5 + $0x238] sm:$0xff] }
  0x3a   :  { %584 = vmatpush.msrb.mxu3 %v237_v58  ;;  %672 = vmatpush.msrb.mxu0 %v271_v59  ;;  %v219_v58 = vld [vmem:[#allocation5 + $0x18] sm:$0xff]  ;;  %v253_v59 = vld [vmem:[#allocation5 + $0x128] sm:$0xff] }
  0x3b   :  { %495 = vmatpush.msrb.mxu2 %v300_v60  ;;  %761 = vmatpush.msrb.mxu1 %v303_v61  ;;  %v282_v60 = vld [vmem:[#allocation5 + $0x210] sm:$0xff]  ;;  %v285_v61 = vld [vmem:[#allocation5 + $0x228] sm:$0xff] }
  0x3c   :  { %370 = vmatmul.f32.gmra.mxu2 %v1135_v62  ;;  %585 = vmatpush.msrb.mxu3 %v235_v0  ;;  %v1195_v0 = vld [vmem:[#allocation2 + $0x1c8] sm:$0xff] }
  0x3d   :  { %459 = vmatmul.f32.gmra.mxu3 %v1137_v63  ;;  %673 = vmatpush.msrb.mxu0 %v269_v1  ;;  %v1197_v1 = vld [vmem:[#allocation2 + $0x1d0] sm:$0xff] }
  0x3e   :  { %496 = vmatpush.msrb.mxu2 %v298_v2  ;;  %762 = vmatpush.msrb.mxu1 %v301_v3  ;;  %v1199_v2 = vld [vmem:[#allocation2 + $0xa8] sm:$0xff]  ;;  %v1201_v3 = vld [vmem:[#allocation2 + $0xb0] sm:$0xff] }
  0x3f   :  { %334 = vmatmul.f32.gmra.mxu0 %v1141_v4  ;;  %423 = vmatmul.f32.gmra.mxu1 %v1143_v5 }
  0x40   :  { %586 = vmatpush.msrb.mxu3 %v233_v6  ;;  %674 = vmatpush.msrb.mxu0 %v267_v7  ;;  %v217_v6 = vld [vmem:[#allocation5 + $0x8] sm:$0xff]  ;;  %v251_v7 = vld [vmem:[#allocation5 + $0x118] sm:$0xff] }
  0x41   :  { %497 = vmatpush.msrb.mxu2 %v296_v8  ;;  %763 = vmatpush.msrb.mxu1 %v299_v9  ;;  %v280_v8 = vld [vmem:[#allocation5 + $0x200] sm:$0xff]  ;;  %v283_v9 = vld [vmem:[#allocation5 + $0x218] sm:$0xff] }
  0x42   :  { %587 = vmatpush.msrb.mxu3 %v231_v10  ;;  %675 = vmatpush.msrb.mxu0 %v265_v11  ;;  %v1207_v10 = vld [vmem:[#allocation2 + $0x1e0] sm:$0xff]  ;;  %v1209_v11 = vld [vmem:[#allocation2 + $0x1e8] sm:$0xff] }
  0x43   :  { %498 = vmatpush.msrb.mxu2 %v294_v12  ;;  %764 = vmatpush.msrb.mxu1 %v297_v13  ;;  %v1211_v12 = vld [vmem:[#allocation2 + $0xc0] sm:$0xff]  ;;  %v1215_v13 = vld [vmem:[#allocation2 + $0xc8] sm:$0xff] }
  0x44   :  { %373 = vmatmul.f32.gmra.mxu2 %v1147_v14  ;;  %588 = vmatpush.msrb.mxu3 %v229_v16  ;;  %v249_v16 = vld [vmem:[#allocation5 + $0x108] sm:$0xff] }
  0x45   :  { %462 = vmatmul.f32.gmra.mxu3 %v1149_v15  ;;  %676 = vmatpush.msrb.mxu0 %v263_v17  ;;  %v281_v17 = vld [vmem:[#allocation5 + $0x208] sm:$0xff] }
  0x46   :  { %499 = vmatpush.msrb.mxu2 %v292_v20  ;;  %765 = vmatpush.msrb.mxu1 %v295_v21  ;;  %v1219_v20 = vld [vmem:[#allocation2 + $0x1f8] sm:$0xff]  ;;  %v1221_v21 = vld [vmem:[#allocation2 + $0x200] sm:$0xff] }
  0x47   :  { %337 = vmatmul.f32.gmra.mxu0 %v1151_v18  ;;  %426 = vmatmul.f32.gmra.mxu1 %v1155_v19 }
  0x48   :  { %589 = vmatpush.msrb.mxu3 %v227_v22  ;;  %677 = vmatpush.msrb.mxu0 %v261_v23  ;;  %v1225_v22 = vld [vmem:[#allocation2 + $0xd8] sm:$0xff]  ;;  %v1227_v23 = vld [vmem:[#allocation2 + $0xe0] sm:$0xff] }
  0x49   :  { %500 = vmatpush.msrb.mxu2 %v290_v24  ;;  %766 = vmatpush.msrb.mxu1 %v293_v25  ;;  %v1231_v24 = vld [vmem:[#allocation2 + $0x210] sm:$0xff]  ;;  %v1233_v25 = vld [vmem:[#allocation2 + $0x218] sm:$0xff] }
  0x4a   :  { %590 = vmatpush.msrb.mxu3 %v225_v30  ;;  %678 = vmatpush.msrb.mxu0 %v259_v31  ;;  %v1237_v30 = vld [vmem:[#allocation2 + $0xf0] sm:$0xff]  ;;  %v1239_v31 = vld [vmem:[#allocation2 + $0xf8] sm:$0xff] }
  0x4b   :  { %501 = vmatpush.msrb.mxu2 %v288_v34  ;;  %767 = vmatpush.msrb.mxu1 %v291_v35  ;;  %v1243_v34 = vld [vmem:[#allocation2 + $0x228] sm:$0xff]  ;;  %v1245_v35 = vld [vmem:[#allocation2 + $0x230] sm:$0xff] }
  0x4c   :  { %376 = vmatmul.f32.gmra.mxu2 %v1159_v26  ;;  %591 = vmatpush.msrb.mxu3 %v223_v42  ;;  %v1249_v42 = vld [vmem:[#allocation2 + $0x108] sm:$0xff] }
  0x4d   :  { %465 = vmatmul.f32.gmra.mxu3 %v1161_v27  ;;  %679 = vmatpush.msrb.mxu0 %v257_v43  ;;  %v1251_v43 = vld [vmem:[#allocation2 + $0x110] sm:$0xff] }
  0x4e   :  { %502 = vmatpush.msrb.mxu2 %v286_v44  ;;  %768 = vmatpush.msrb.mxu1 %v289_v45  ;;  %v146_v44 = vld [vmem:[#allocation2 + $0x10] sm:$0xff]  ;;  %v149_v45 = vld [vmem:[#allocation2 + $0x28] sm:$0xff] }
  0x4f   :  { %340 = vmatmul.f32.gmra.mxu0 %v1163_v28  ;;  %429 = vmatmul.f32.gmra.mxu1 %v1165_v29 }
  0x50   :  { %592 = vmatpush.msrb.mxu3 %v221_v48  ;;  %680 = vmatpush.msrb.mxu0 %v255_v49  ;;  %v152_v48 = vld [vmem:[#allocation2 + $0x40] sm:$0xff]  ;;  %v155_v49 = vld [vmem:[#allocation2 + $0x58] sm:$0xff] }
  0x51   :  { %503 = vmatpush.msrb.mxu2 %v284_v56  ;;  %769 = vmatpush.msrb.mxu1 %v287_v57  ;;  %v161_v56 = vld [vmem:[#allocation2 + $0x88] sm:$0xff] }
  0x52   :  { %593 = vmatpush.msrb.mxu3 %v219_v58  ;;  %681 = vmatpush.msrb.mxu0 %v253_v59  ;;  %v164_v59 = vld [vmem:[#allocation2 + $0xa0] sm:$0xff] }
  0x53   :  { %504 = vmatpush.msrb.mxu2 %v282_v60  ;;  %770 = vmatpush.msrb.mxu1 %v285_v61 }
  0x54   :  { %379 = vmatmul.f32.gmra.mxu2 %v1171_v38  ;;  %594 = vmatpush.msrb.mxu3 %v217_v6 }
  0x55   :  { %468 = vmatmul.f32.gmra.mxu3 %v1173_v39  ;;  %682 = vmatpush.msrb.mxu0 %v251_v7  ;;  %v167_v7 = vld [vmem:[#allocation2 + $0xb8] sm:$0xff] }
  0x56   :  { %505 = vmatpush.msrb.mxu2 %v280_v8  ;;  %771 = vmatpush.msrb.mxu1 %v283_v9 }
  0x57   :  { %343 = vmatmul.f32.gmra.mxu0 %v1175_v40  ;;  %432 = vmatmul.f32.gmra.mxu1 %v1177_v41 }
  0x58   :  { %683 = vmatpush.msrb.mxu0 %v249_v16  ;;  %772 = vmatpush.msrb.mxu1 %v281_v17  ;;  %v170_v17 = vld [vmem:[#allocation2 + $0xd0] sm:$0xff] }
  0x5c   :  { %382 = vmatmul.f32.gmra.mxu2 %v1183_v50 }
  0x5d   :  { %471 = vmatmul.f32.gmra.mxu3 %v1185_v51 }
  0x5f   :  { %346 = vmatmul.f32.gmra.mxu0 %v1187_v54  ;;  %435 = vmatmul.f32.gmra.mxu1 %v1189_v55 }
  0x64   :  { %385 = vmatmul.f32.gmra.mxu2 %v1195_v0 }
  0x65   :  { %474 = vmatmul.f32.gmra.mxu3 %v1197_v1 }
  0x67   :  { %349 = vmatmul.f32.gmra.mxu0 %v1199_v2  ;;  %438 = vmatmul.f32.gmra.mxu1 %v1201_v3 }
  0x6c   :  { %388 = vmatmul.f32.gmra.mxu2 %v1207_v10 }
  0x6d   :  { %477 = vmatmul.f32.gmra.mxu3 %v1209_v11 }
  0x6f   :  { %352 = vmatmul.f32.gmra.mxu0 %v1211_v12  ;;  %441 = vmatmul.f32.gmra.mxu1 %v1215_v13 }
  0x74   :  { %391 = vmatmul.f32.gmra.mxu2 %v1219_v20 }
  0x75   :  { %480 = vmatmul.f32.gmra.mxu3 %v1221_v21 }
  0x77   :  { %355 = vmatmul.f32.gmra.mxu0 %v1225_v22  ;;  %444 = vmatmul.f32.gmra.mxu1 %v1227_v23 }
  0x7c   :  { %394 = vmatmul.f32.gmra.mxu2 %v1231_v24 }
  0x7d   :  { %483 = vmatmul.f32.gmra.mxu3 %v1233_v25 }
  0x7f   :  { %358 = vmatmul.f32.gmra.mxu0 %v1237_v30  ;;  %447 = vmatmul.f32.gmra.mxu1 %v1239_v31 }
  0x84   :  { %397 = vmatmul.f32.gmra.mxu2 %v1243_v34 }
  0x85   :  { %486 = vmatmul.f32.gmra.mxu3 %v1245_v35 }
  0x87   :  { %361 = vmatmul.f32.gmra.mxu0 %v1249_v42  ;;  %450 = vmatmul.f32.gmra.mxu1 %v1251_v43 }
  0x8c   :  { %506 = vmatmul.f32.vlgmr.msrb.gmra.mxu2 %v146_v44 }
  0x8d   :  { %595 = vmatmul.f32.vlgmr.msrb.gmra.mxu3 %v1117_v36  ;;  %v158_v36 = vld [vmem:[#allocation2 + $0x70] sm:$0xff] }
  0x8f   :  { %684 = vmatmul.f32.vlgmr.msrb.gmra.mxu0 %v1119_v37  ;;  %773 = vmatmul.f32.vlgmr.msrb.gmra.mxu1 %v146_v44 }
  0x94   :  { %509 = vmatmul.f32.gmra.mxu2 %v149_v45 }
  0x95   :  { %598 = vmatmul.f32.gmra.mxu3 %v1129_v52 }
  0x97   :  { %687 = vmatmul.f32.gmra.mxu0 %v1131_v53  ;;  %776 = vmatmul.f32.gmra.mxu1 %v149_v45 }
  0x9c   :  { %512 = vmatmul.f32.gmra.mxu2 %v152_v48 }
  0x9d   :  { %601 = vmatmul.f32.gmra.mxu3 %v1141_v4 }
  0x9f   :  { %690 = vmatmul.f32.gmra.mxu0 %v1143_v5  ;;  %779 = vmatmul.f32.gmra.mxu1 %v152_v48 }
  0xa4   :  { %515 = vmatmul.f32.gmra.mxu2 %v155_v49 }
  0xa5   :  { %604 = vmatmul.f32.gmra.mxu3 %v1151_v18 }
  0xa7   :  { %693 = vmatmul.f32.gmra.mxu0 %v1155_v19  ;;  %782 = vmatmul.f32.gmra.mxu1 %v155_v49  ;;  %v173_v49 = vld [vmem:[#allocation2 + $0xe8] sm:$0xff] }
  0xac   :  { %518 = vmatmul.f32.gmra.mxu2 %v158_v36  ;;  %v1264_v37 = vpop.f32.mrf.mxu0  ;;  %v1266_v52 = vpop.f32.mrf.mxu1 }
  0xad   :  { %607 = vmatmul.f32.gmra.mxu3 %v1163_v28 }
  0xaf   :  { %v365_v53 = vpop.f32.mrf.mxu2  ;;  %696 = vmatmul.f32.gmra.mxu0 %v1165_v29  ;;  %785 = vmatmul.f32.gmra.mxu1 %v158_v36 }
  0xb0   :  { %v454_v4 = vpop.f32.mrf.mxu3 }
  0xb1   :  { %v1269_v5 = vadd.f32 %v454_v4, %v365_v53 }
  0xb4   :  { %521 = vmatmul.f32.gmra.mxu2 %v161_v56  ;;  %v1272_v18 = vpop.f32.mrf.mxu0  ;;  %v1274_v19 = vpop.f32.mrf.mxu1 }
  0xb5   :  { %610 = vmatmul.f32.gmra.mxu3 %v1175_v40 }
  0xb7   :  { %v368_v28 = vpop.f32.mrf.mxu2  ;;  %699 = vmatmul.f32.gmra.mxu0 %v1177_v41  ;;  %788 = vmatmul.f32.gmra.mxu1 %v161_v56  ;;  %v176_v56 = vld [vmem:[#allocation2 + $0x100] sm:$0xff] }
  0xb8   :  { %v457_v57 = vpop.f32.mrf.mxu3 }
  0xb9   :  { %v1277_v58 = vadd.f32 %v457_v57, %v368_v28 }
  0xbc   :  { %524 = vmatmul.f32.gmra.mxu2 %v164_v59  ;;  %v1280_v29 = vpop.f32.mrf.mxu0  ;;  %v1282_v60 = vpop.f32.mrf.mxu1 }
  0xbd   :  { %613 = vmatmul.f32.gmra.mxu3 %v1187_v54 }
  0xbf   :  { %v371_v40 = vpop.f32.mrf.mxu2  ;;  %702 = vmatmul.f32.gmra.mxu0 %v1189_v55  ;;  %791 = vmatmul.f32.gmra.mxu1 %v164_v59 }
  0xc0   :  { %v460_v61 = vpop.f32.mrf.mxu3 }
  0xc1   :  { %v1285_v6 = vadd.f32 %v460_v61, %v371_v40  ;;  %v179_v40 = vld [vmem:[#allocation2 + $0x118] sm:$0xff] }
  0xc4   :  { %527 = vmatmul.f32.gmra.mxu2 %v167_v7  ;;  %v1288_v41 = vpop.f32.mrf.mxu0  ;;  %v1290_v8 = vpop.f32.mrf.mxu1 }
  0xc5   :  { %616 = vmatmul.f32.gmra.mxu3 %v1199_v2 }
  0xc7   :  { %v374_v54 = vpop.f32.mrf.mxu2  ;;  %705 = vmatmul.f32.gmra.mxu0 %v1201_v3  ;;  %794 = vmatmul.f32.gmra.mxu1 %v167_v7 }
  0xc8   :  { %v463_v9 = vpop.f32.mrf.mxu3 }
  0xc9   :  { %v1293_v16 = vadd.f32 %v463_v9, %v374_v54  ;;  %v182_v9 = vld [vmem:[#allocation2 + $0x130] sm:$0xff] }
  0xcc   :  { %530 = vmatmul.f32.gmra.mxu2 %v170_v17  ;;  %v1296_v55 = vpop.f32.mrf.mxu0  ;;  %v1298_v44 = vpop.f32.mrf.mxu1 }
  0xcd   :  { %619 = vmatmul.f32.gmra.mxu3 %v1211_v12 }
  0xcf   :  { %v377_v2 = vpop.f32.mrf.mxu2  ;;  %708 = vmatmul.f32.gmra.mxu0 %v1215_v13  ;;  %797 = vmatmul.f32.gmra.mxu1 %v170_v17 }
  0xd0   :  { %v466_v45 = vpop.f32.mrf.mxu3 }
  0xd1   :  { %v1301_v48 = vadd.f32 %v466_v45, %v377_v2 }
  0xd4   :  { %533 = vmatmul.f32.gmra.mxu2 %v173_v49  ;;  %v1304_v3 = vpop.f32.mrf.mxu0  ;;  %v1306_v36 = vpop.f32.mrf.mxu1 }
  0xd5   :  { %622 = vmatmul.f32.gmra.mxu3 %v1225_v22 }
  0xd7   :  { %v380_v12 = vpop.f32.mrf.mxu2  ;;  %711 = vmatmul.f32.gmra.mxu0 %v1227_v23  ;;  %800 = vmatmul.f32.gmra.mxu1 %v173_v49  ;;  %v185_v49 = vld [vmem:[#allocation2 + $0x148] sm:$0xff] }
  0xd8   :  { %v469_v53 = vpop.f32.mrf.mxu3 }
  0xd9   :  { %v1309_v4 = vadd.f32 %v469_v53, %v380_v12 }
  0xdc   :  { %536 = vmatmul.f32.gmra.mxu2 %v176_v56  ;;  %v1312_v13 = vpop.f32.mrf.mxu0  ;;  %v1314_v28 = vpop.f32.mrf.mxu1 }
  0xdd   :  { %625 = vmatmul.f32.gmra.mxu3 %v1237_v30 }
  0xdf   :  { %v383_v22 = vpop.f32.mrf.mxu2  ;;  %714 = vmatmul.f32.gmra.mxu0 %v1239_v31  ;;  %803 = vmatmul.f32.gmra.mxu1 %v176_v56 }
  0xe0   :  { %v472_v57 = vpop.f32.mrf.mxu3 }
  0xe1   :  { %v1317_v59 = vadd.f32 %v472_v57, %v383_v22  ;;  %v188_v22 = vld [vmem:[#allocation2 + $0x160] sm:$0xff] }
  0xe4   :  { %539 = vmatmul.f32.gmra.mxu2 %v179_v40  ;;  %v1320_v23 = vpop.f32.mrf.mxu0  ;;  %v1322_v61 = vpop.f32.mrf.mxu1 }
  0xe5   :  { %628 = vmatmul.f32.gmra.mxu3 %v1249_v42 }
  0xe7   :  { %v386_v30 = vpop.f32.mrf.mxu2  ;;  %717 = vmatmul.f32.gmra.mxu0 %v1251_v43  ;;  %806 = vmatmul.f32.gmra.mxu1 %v179_v40 }
  0xe8   :  { %v475_v7 = vpop.f32.mrf.mxu3 }
  0xe9   :  { %v1325_v54 = vadd.f32 %v475_v7, %v386_v30  ;;  %v191_v7 = vld [vmem:[#allocation2 + $0x178] sm:$0xff] }
  0xec   :  { %542 = vmatmul.f32.gmra.mxu2 %v182_v9  ;;  %v1328_v31 = vpop.f32.mrf.mxu0  ;;  %v1330_v17 = vpop.f32.mrf.mxu1 }
  0xed   :  { %631 = vmatmul.f32.gmra.mxu3 %v1111_v32 }
  0xef   :  { %v389_v42 = vpop.f32.mrf.mxu2  ;;  %720 = vmatmul.f32.gmra.mxu0 %v1113_v33  ;;  %809 = vmatmul.f32.gmra.mxu1 %v182_v9 }
  0xf0   :  { %v478_v2 = vpop.f32.mrf.mxu3 }
  0xf1   :  { %v1333_v45 = vadd.f32 %v478_v2, %v389_v42 }
  0xf4   :  { %545 = vmatmul.f32.gmra.mxu2 %v185_v49  ;;  %v1336_v43 = vpop.f32.mrf.mxu0  ;;  %v1338_v12 = vpop.f32.mrf.mxu1 }
  0xf5   :  { %634 = vmatmul.f32.gmra.mxu3 %v1123_v46 }
  0xf7   :  { %v392_v32 = vpop.f32.mrf.mxu2  ;;  %723 = vmatmul.f32.gmra.mxu0 %v1125_v47  ;;  %812 = vmatmul.f32.gmra.mxu1 %v185_v49  ;;  %v194_v49 = vld [vmem:[#allocation2 + $0x190] sm:$0xff] }
  0xf8   :  { %v481_v53 = vpop.f32.mrf.mxu3 }
  0xf9   :  { %v1341_v56 = vadd.f32 %v481_v53, %v392_v32 }
  0xfc   :  { %548 = vmatmul.f32.gmra.mxu2 %v188_v22  ;;  %v1344_v33 = vpop.f32.mrf.mxu0  ;;  %v1346_v57 = vpop.f32.mrf.mxu1 }
  0xfd   :  { %637 = vmatmul.f32.gmra.mxu3 %v1135_v62 }
  0xff   :  { %v395_v46 = vpop.f32.mrf.mxu2  ;;  %726 = vmatmul.f32.gmra.mxu0 %v1137_v63  ;;  %815 = vmatmul.f32.gmra.mxu1 %v188_v22 }
 0x100   :  { %v484_v40 = vpop.f32.mrf.mxu3 }
 0x101   :  { %v1349_v30 = vadd.f32 %v484_v40, %v395_v46 }
 0x104   :  { %551 = vmatmul.f32.gmra.mxu2 %v191_v7  ;;  %v1352_v47 = vpop.f32.mrf.mxu0  ;;  %v1354_v9 = vpop.f32.mrf.mxu1 }
 0x105   :  { %640 = vmatmul.f32.gmra.mxu3 %v1147_v14  ;;  %v419_v14 = vadd.f32 %v1266_v52, %v1264_v37 }
 0x107   :  { %v398_v62 = vpop.f32.mrf.mxu2  ;;  %729 = vmatmul.f32.gmra.mxu0 %v1149_v15  ;;  %818 = vmatmul.f32.gmra.mxu1 %v191_v7  ;;  %v197_v15 = vld [vmem:[#allocation2 + $0x1a8] sm:$0xff] }
 0x108   :  { %v487_v42 = vpop.f32.mrf.mxu3 }
 0x109   :  { %v1357_v2 = vadd.f32 %v487_v42, %v398_v62  ;;  %v422_v42 = vadd.f32 %v1274_v19, %v1272_v18 }
 0x10c   :  { %554 = vmatmul.f32.gmra.mxu2 %v194_v49  ;;  %v685_v63 = vpop.f32.mrf.mxu0  ;;  %v774_v32 = vpop.f32.mrf.mxu1 }
 0x10d   :  { %643 = vmatmul.f32.gmra.mxu3 %v1159_v26 }
 0x10f   :  { %v507_v53 = vpop.f32.mrf.mxu2  ;;  %732 = vmatmul.f32.gmra.mxu0 %v1161_v27  ;;  %821 = vmatmul.f32.gmra.mxu1 %v194_v49 }
 0x110   :  { %v596_v22 = vpop.f32.mrf.mxu3  ;;  %v508_v46 = vadd.f32 %v507_v53, %v419_v14  ;;  %v425_v53 = vadd.f32 %v1282_v60, %v1280_v29 }
 0x111   :  { %v686_v40 = vadd.f32 %v685_v63, %v596_v22  ;;  %v200_v63 = vld [vmem:[#allocation2 + $0x1c0] sm:$0xff] }
 0x112   :  { %894 = vst [vmem:[#allocation7] sm:$0xff] %v508_v46  ;;  %v203_v46 = vld [vmem:[#allocation2 + $0x1d8] sm:$0xff] }
 0x113   :  { %v775_v7 = vadd.f32 %v774_v32, %v686_v40 }
 0x114   :  { %557 = vmatmul.f32.gmra.mxu2 %v197_v15  ;;  %v688_v62 = vpop.f32.mrf.mxu0  ;;  %v777_v26 = vpop.f32.mrf.mxu1 }
 0x115   :  { %646 = vmatmul.f32.gmra.mxu3 %v1171_v38  ;;  %895 = vst [vmem:[#allocation7 + $0x8] sm:$0xff] %v775_v7  ;;  %v428_v7 = vadd.f32 %v1290_v8, %v1288_v41 }
 0x117   :  { %v510_v37 = vpop.f32.mrf.mxu2  ;;  %735 = vmatmul.f32.gmra.mxu0 %v1173_v39  ;;  %824 = vmatmul.f32.gmra.mxu1 %v197_v15 }
 0x118   :  { %v599_v52 = vpop.f32.mrf.mxu3  ;;  %v511_v27 = vadd.f32 %v510_v37, %v422_v42 }
 0x119   :  { %v689_v49 = vadd.f32 %v688_v62, %v599_v52  ;;  %v431_v52 = vadd.f32 %v1298_v44, %v1296_v55 }
 0x11a   :  { %896 = vst [vmem:[#allocation7 + $0x10] sm:$0xff] %v511_v27 }
 0x11b   :  { %v778_v14 = vadd.f32 %v777_v26, %v689_v49  ;;  %v206_v26 = vld [vmem:[#allocation2 + $0x1f0] sm:$0xff]  ;;  %v209_v49 = vld [vmem:[#allocation2 + $0x208] sm:$0xff] }
 0x11c   :  { %560 = vmatmul.f32.gmra.mxu2 %v200_v63  ;;  %v691_v38 = vpop.f32.mrf.mxu0  ;;  %v780_v32 = vpop.f32.mrf.mxu1 }
 0x11d   :  { %649 = vmatmul.f32.gmra.mxu3 %v1183_v50  ;;  %897 = vst [vmem:[#allocation7 + $0x18] sm:$0xff] %v778_v14 }
 0x11f   :  { %v513_v18 = vpop.f32.mrf.mxu2  ;;  %738 = vmatmul.f32.gmra.mxu0 %v1185_v51  ;;  %827 = vmatmul.f32.gmra.mxu1 %v200_v63 }
 0x120   :  { %v602_v19 = vpop.f32.mrf.mxu3  ;;  %v514_v39 = vadd.f32 %v513_v18, %v425_v53  ;;  %v212_v53 = vld [vmem:[#allocation2 + $0x220] sm:$0xff] }
 0x121   :  { %v692_v22 = vadd.f32 %v691_v38, %v602_v19  ;;  %v434_v38 = vadd.f32 %v1306_v36, %v1304_v3 }
 0x122   :  { %898 = vst [vmem:[#allocation7 + $0x20] sm:$0xff] %v514_v39  ;;  %v437_v39 = vadd.f32 %v1314_v28, %v1312_v13 }
 0x123   :  { %v781_v40 = vadd.f32 %v780_v32, %v692_v22 }
 0x124   :  { %563 = vmatmul.f32.gmra.mxu2 %v203_v46  ;;  %v694_v50 = vpop.f32.mrf.mxu0  ;;  %v783_v15 = vpop.f32.mrf.mxu1 }
 0x125   :  { %652 = vmatmul.f32.gmra.mxu3 %v1195_v0  ;;  %899 = vst [vmem:[#allocation7 + $0x28] sm:$0xff] %v781_v40 }
 0x127   :  { %v516_v29 = vpop.f32.mrf.mxu2  ;;  %741 = vmatmul.f32.gmra.mxu0 %v1197_v1  ;;  %830 = vmatmul.f32.gmra.mxu1 %v203_v46  ;;  %v215_v46 = vld [vmem:[#allocation2 + $0x238] sm:$0xff] }
 0x128   :  { %v605_v60 = vpop.f32.mrf.mxu3  ;;  %v517_v51 = vadd.f32 %v516_v29, %v428_v7 }
 0x129   :  { %v695_v62 = vadd.f32 %v694_v50, %v605_v60 }
 0x12a   :  { %900 = vst [vmem:[#allocation7 + $0x30] sm:$0xff] %v517_v51 }
 0x12b   :  { %v784_v42 = vadd.f32 %v783_v15, %v695_v62  ;;  %v440_v15 = vadd.f32 %v1322_v61, %v1320_v23 }
 0x12c   :  { %566 = vmatmul.f32.gmra.mxu2 %v206_v26  ;;  %v697_v0 = vpop.f32.mrf.mxu0  ;;  %v786_v37 = vpop.f32.mrf.mxu1 }
 0x12d   :  { %655 = vmatmul.f32.gmra.mxu3 %v1207_v10  ;;  %901 = vst [vmem:[#allocation7 + $0x38] sm:$0xff] %v784_v42 }
 0x12f   :  { %v519_v41 = vpop.f32.mrf.mxu2  ;;  %744 = vmatmul.f32.gmra.mxu0 %v1209_v11  ;;  %833 = vmatmul.f32.gmra.mxu1 %v206_v26 }
 0x130   :  { %v608_v8 = vpop.f32.mrf.mxu3  ;;  %v520_v1 = vadd.f32 %v519_v41, %v431_v52 }
 0x131   :  { %v698_v27 = vadd.f32 %v697_v0, %v608_v8 }
 0x132   :  { %902 = vst [vmem:[#allocation7 + $0x40] sm:$0xff] %v520_v1 }
 0x133   :  { %v787_v63 = vadd.f32 %v786_v37, %v698_v27 }
 0x134   :  { %569 = vmatmul.f32.gmra.mxu2 %v209_v49  ;;  %v700_v10 = vpop.f32.mrf.mxu0  ;;  %v789_v14 = vpop.f32.mrf.mxu1 }
 0x135   :  { %658 = vmatmul.f32.gmra.mxu3 %v1219_v20  ;;  %903 = vst [vmem:[#allocation7 + $0x48] sm:$0xff] %v787_v63 }
 0x137   :  { %v522_v55 = vpop.f32.mrf.mxu2  ;;  %747 = vmatmul.f32.gmra.mxu0 %v1221_v21  ;;  %836 = vmatmul.f32.gmra.mxu1 %v209_v49  ;;  %v449_v49 = vadd.f32 %v1346_v57, %v1344_v33 }
 0x138   :  { %v611_v44 = vpop.f32.mrf.mxu3  ;;  %v523_v11 = vadd.f32 %v522_v55, %v434_v38 }
 0x139   :  { %v701_v32 = vadd.f32 %v700_v10, %v611_v44  ;;  %v452_v44 = vadd.f32 %v1354_v9, %v1352_v47 }
 0x13a   :  { %904 = vst [vmem:[#allocation7 + $0x50] sm:$0xff] %v523_v11 }
 0x13b   :  { %v790_v18 = vadd.f32 %v789_v14, %v701_v32 }
 0x13c   :  { %572 = vmatmul.f32.gmra.mxu2 %v212_v53  ;;  %v703_v20 = vpop.f32.mrf.mxu0  ;;  %v792_v19 = vpop.f32.mrf.mxu1 }
 0x13d   :  { %661 = vmatmul.f32.gmra.mxu3 %v1231_v24  ;;  %905 = vst [vmem:[#allocation7 + $0x58] sm:$0xff] %v790_v18 }
 0x13f   :  { %v525_v3 = vpop.f32.mrf.mxu2  ;;  %750 = vmatmul.f32.gmra.mxu0 %v1233_v25  ;;  %839 = vmatmul.f32.gmra.mxu1 %v212_v53 }
 0x140   :  { %v614_v36 = vpop.f32.mrf.mxu3  ;;  %v526_v21 = vadd.f32 %v525_v3, %v437_v39 }
 0x141   :  { %v704_v22 = vadd.f32 %v703_v20, %v614_v36 }
 0x142   :  { %906 = vst [vmem:[#allocation7 + $0x60] sm:$0xff] %v526_v21 }
 0x143   :  { %v793_v40 = vadd.f32 %v792_v19, %v704_v22 }
 0x144   :  { %575 = vmatmul.f32.gmra.mxu2 %v215_v46  ;;  %v706_v24 = vpop.f32.mrf.mxu0  ;;  %v795_v50 = vpop.f32.mrf.mxu1 }
 0x145   :  { %664 = vmatmul.f32.gmra.mxu3 %v1243_v34  ;;  %907 = vst [vmem:[#allocation7 + $0x68] sm:$0xff] %v793_v40  ;;  %v443_v34 = vadd.f32 %v1330_v17, %v1328_v31 }
 0x147   :  { %v528_v13 = vpop.f32.mrf.mxu2  ;;  %753 = vmatmul.f32.gmra.mxu0 %v1245_v35  ;;  %842 = vmatmul.f32.gmra.mxu1 %v215_v46  ;;  %v446_v35 = vadd.f32 %v1338_v12, %v1336_v43 }
 0x148   :  { %v617_v28 = vpop.f32.mrf.mxu3  ;;  %v529_v25 = vadd.f32 %v528_v13, %v440_v15 }
 0x149   :  { %v707_v7 = vadd.f32 %v706_v24, %v617_v28 }
 0x14a   :  { %908 = vst [vmem:[#allocation7 + $0x70] sm:$0xff] %v529_v25 }
 0x14b   :  { %v796_v29 = vadd.f32 %v795_v50, %v707_v7 }
 0x14c   :  { %v709_v60 = vpop.f32.mrf.mxu0  ;;  %v798_v51 = vpop.f32.mrf.mxu1 }
 0x14d   :  { %909 = vst [vmem:[#allocation7 + $0x78] sm:$0xff] %v796_v29 }
 0x14f   :  { %v531_v62 = vpop.f32.mrf.mxu2 }
 0x150   :  { %v620_v26 = vpop.f32.mrf.mxu3  ;;  %v532_v42 = vadd.f32 %v531_v62, %v443_v34 }
 0x151   :  { %v710_v23 = vadd.f32 %v709_v60, %v620_v26 }
 0x152   :  { %910 = vst [vmem:[#allocation7 + $0x80] sm:$0xff] %v532_v42 }
 0x153   :  { %v799_v61 = vadd.f32 %v798_v51, %v710_v23 }
 0x154   :  { %v712_v0 = vpop.f32.mrf.mxu0  ;;  %v801_v37 = vpop.f32.mrf.mxu1 }
 0x155   :  { %911 = vst [vmem:[#allocation7 + $0x88] sm:$0xff] %v799_v61 }
 0x157   :  { %v534_v52 = vpop.f32.mrf.mxu2 }
 0x158   :  { %v623_v41 = vpop.f32.mrf.mxu3  ;;  %v535_v8 = vadd.f32 %v534_v52, %v446_v35 }
 0x159   :  { %v713_v1 = vadd.f32 %v712_v0, %v623_v41 }
 0x15a   :  { %912 = vst [vmem:[#allocation7 + $0x90] sm:$0xff] %v535_v8 }
 0x15b   :  { %v802_v27 = vadd.f32 %v801_v37, %v713_v1 }
 0x15c   :  { %v715_v31 = vpop.f32.mrf.mxu0  ;;  %v804_v17 = vpop.f32.mrf.mxu1 }
 0x15d   :  { %913 = vst [vmem:[#allocation7 + $0x98] sm:$0xff] %v802_v27 }
 0x15f   :  { %v537_v63 = vpop.f32.mrf.mxu2 }
 0x160   :  { %v626_v10 = vpop.f32.mrf.mxu3  ;;  %v538_v14 = vadd.f32 %v537_v63, %v449_v49 }
 0x161   :  { %v716_v38 = vadd.f32 %v715_v31, %v626_v10 }
 0x162   :  { %914 = vst [vmem:[#allocation7 + $0xa0] sm:$0xff] %v538_v14 }
 0x163   :  { %v805_v55 = vadd.f32 %v804_v17, %v716_v38 }
 0x164   :  { %v718_v43 = vpop.f32.mrf.mxu0  ;;  %v807_v12 = vpop.f32.mrf.mxu1 }
 0x165   :  { %915 = vst [vmem:[#allocation7 + $0xa8] sm:$0xff] %v805_v55 }
 0x167   :  { %v540_v11 = vpop.f32.mrf.mxu2 }
 0x168   :  { %v629_v32 = vpop.f32.mrf.mxu3  ;;  %v541_v53 = vadd.f32 %v540_v11, %v452_v44 }
 0x169   :  { %v719_v18 = vadd.f32 %v718_v43, %v629_v32 }
 0x16a   :  { %916 = vst [vmem:[#allocation7 + $0xb0] sm:$0xff] %v541_v53 }
 0x16b   :  { %v808_v20 = vadd.f32 %v807_v12, %v719_v18 }
 0x16c   :  { %v721_v33 = vpop.f32.mrf.mxu0  ;;  %v810_v57 = vpop.f32.mrf.mxu1 }
 0x16d   :  { %917 = vst [vmem:[#allocation7 + $0xb8] sm:$0xff] %v808_v20 }
 0x16f   :  { %v543_v19 = vpop.f32.mrf.mxu2 }
 0x170   :  { %v632_v39 = vpop.f32.mrf.mxu3  ;;  %v544_v3 = vadd.f32 %v543_v19, %v1269_v5 }
 0x171   :  { %v722_v36 = vadd.f32 %v721_v33, %v632_v39 }
 0x172   :  { %918 = vst [vmem:[#allocation7 + $0xc0] sm:$0xff] %v544_v3 }
 0x173   :  { %v811_v21 = vadd.f32 %v810_v57, %v722_v36 }
 0x174   :  { %v724_v22 = vpop.f32.mrf.mxu0  ;;  %v813_v46 = vpop.f32.mrf.mxu1 }
 0x175   :  { %919 = vst [vmem:[#allocation7 + $0xc8] sm:$0xff] %v811_v21 }
 0x177   :  { %v546_v47 = vpop.f32.mrf.mxu2 }
 0x178   :  { %v635_v9 = vpop.f32.mrf.mxu3  ;;  %v547_v40 = vadd.f32 %v546_v47, %v1277_v58 }
 0x179   :  { %v725_v24 = vadd.f32 %v724_v22, %v635_v9 }
 0x17a   :  { %920 = vst [vmem:[#allocation7 + $0xd0] sm:$0xff] %v547_v40 }
 0x17b   :  { %v814_v50 = vadd.f32 %v813_v46, %v725_v24 }
 0x17c   :  { %v727_v15 = vpop.f32.mrf.mxu0  ;;  %v816_v13 = vpop.f32.mrf.mxu1 }
 0x17d   :  { %921 = vst [vmem:[#allocation7 + $0xd8] sm:$0xff] %v814_v50 }
 0x17f   :  { %v549_v28 = vpop.f32.mrf.mxu2 }
 0x180   :  { %v638_v25 = vpop.f32.mrf.mxu3  ;;  %v550_v5 = vadd.f32 %v549_v28, %v1285_v6 }
 0x181   :  { %v728_v7 = vadd.f32 %v727_v15, %v638_v25 }
 0x182   :  { %922 = vst [vmem:[#allocation7 + $0xe0] sm:$0xff] %v550_v5 }
 0x183   :  { %v817_v29 = vadd.f32 %v816_v13, %v728_v7 }
 0x184   :  { %v730_v60 = vpop.f32.mrf.mxu0  ;;  %v819_v51 = vpop.f32.mrf.mxu1 }
 0x185   :  { %923 = vst [vmem:[#allocation7 + $0xe8] sm:$0xff] %v817_v29 }
 0x187   :  { %v552_v34 = vpop.f32.mrf.mxu2 }
 0x188   :  { %v641_v62 = vpop.f32.mrf.mxu3  ;;  %v553_v58 = vadd.f32 %v552_v34, %v1293_v16 }
 0x189   :  { %v731_v26 = vadd.f32 %v730_v60, %v641_v62 }
 0x18a   :  { %924 = vst [vmem:[#allocation7 + $0xf0] sm:$0xff] %v553_v58 }
 0x18b   :  { %v820_v42 = vadd.f32 %v819_v51, %v731_v26 }
 0x18c   :  { %v733_v23 = vpop.f32.mrf.mxu0  ;;  %v822_v61 = vpop.f32.mrf.mxu1 }
 0x18d   :  { %925 = vst [vmem:[#allocation7 + $0xf8] sm:$0xff] %v820_v42 }
 0x18f   :  { %v555_v0 = vpop.f32.mrf.mxu2 }
 0x190   :  { %v644_v37 = vpop.f32.mrf.mxu3  ;;  %v556_v6 = vadd.f32 %v555_v0, %v1301_v48 }
 0x191   :  { %v734_v35 = vadd.f32 %v733_v23, %v644_v37 }
 0x192   :  { %926 = vst [vmem:[#allocation7 + $0x100] sm:$0xff] %v556_v6 }
 0x193   :  { %v823_v52 = vadd.f32 %v822_v61, %v734_v35 }
 0x194   :  { %v736_v41 = vpop.f32.mrf.mxu0  ;;  %v825_v8 = vpop.f32.mrf.mxu1 }
 0x195   :  { %927 = vst [vmem:[#allocation7 + $0x108] sm:$0xff] %v823_v52 }
 0x197   :  { %v558_v1 = vpop.f32.mrf.mxu2 }
 0x198   :  { %v647_v27 = vpop.f32.mrf.mxu3  ;;  %v559_v16 = vadd.f32 %v558_v1, %v1309_v4 }
 0x199   :  { %v737_v31 = vadd.f32 %v736_v41, %v647_v27 }
 0x19a   :  { %928 = vst [vmem:[#allocation7 + $0x110] sm:$0xff] %v559_v16 }
 0x19b   :  { %v826_v17 = vadd.f32 %v825_v8, %v737_v31 }
 0x19c   :  { %v739_v49 = vpop.f32.mrf.mxu0  ;;  %v828_v63 = vpop.f32.mrf.mxu1 }
 0x19d   :  { %929 = vst [vmem:[#allocation7 + $0x118] sm:$0xff] %v826_v17 }
 0x19f   :  { %v561_v10 = vpop.f32.mrf.mxu2 }
 0x1a0   :  { %v650_v14 = vpop.f32.mrf.mxu3  ;;  %v562_v48 = vadd.f32 %v561_v10, %v1317_v59 }
 0x1a1   :  { %v740_v38 = vadd.f32 %v739_v49, %v650_v14 }
 0x1a2   :  { %930 = vst [vmem:[#allocation7 + $0x120] sm:$0xff] %v562_v48 }
 0x1a3   :  { %v829_v55 = vadd.f32 %v828_v63, %v740_v38 }
 0x1a4   :  { %v742_v43 = vpop.f32.mrf.mxu0  ;;  %v831_v12 = vpop.f32.mrf.mxu1 }
 0x1a5   :  { %931 = vst [vmem:[#allocation7 + $0x128] sm:$0xff] %v829_v55 }
 0x1a7   :  { %v564_v44 = vpop.f32.mrf.mxu2 }
 0x1a8   :  { %v653_v11 = vpop.f32.mrf.mxu3  ;;  %v565_v4 = vadd.f32 %v564_v44, %v1325_v54 }
 0x1a9   :  { %v743_v32 = vadd.f32 %v742_v43, %v653_v11 }
 0x1aa   :  { %932 = vst [vmem:[#allocation7 + $0x130] sm:$0xff] %v565_v4 }
 0x1ab   :  { %v832_v53 = vadd.f32 %v831_v12, %v743_v32 }
 0x1ac   :  { %v745_v18 = vpop.f32.mrf.mxu0  ;;  %v834_v20 = vpop.f32.mrf.mxu1 }
 0x1ad   :  { %933 = vst [vmem:[#allocation7 + $0x138] sm:$0xff] %v832_v53 }
 0x1af   :  { %v567_v33 = vpop.f32.mrf.mxu2 }
 0x1b0   :  { %v656_v57 = vpop.f32.mrf.mxu3  ;;  %v568_v59 = vadd.f32 %v567_v33, %v1333_v45 }
 0x1b1   :  { %v746_v19 = vadd.f32 %v745_v18, %v656_v57 }
 0x1b2   :  { %934 = vst [vmem:[#allocation7 + $0x140] sm:$0xff] %v568_v59 }
 0x1b3   :  { %v835_v39 = vadd.f32 %v834_v20, %v746_v19 }
 0x1b4   :  { %v748_v3 = vpop.f32.mrf.mxu0  ;;  %v837_v36 = vpop.f32.mrf.mxu1 }
 0x1b5   :  { %935 = vst [vmem:[#allocation7 + $0x148] sm:$0xff] %v835_v39 }
 0x1b7   :  { %v570_v21 = vpop.f32.mrf.mxu2 }
 0x1b8   :  { %v659_v22 = vpop.f32.mrf.mxu3  ;;  %v571_v54 = vadd.f32 %v570_v21, %v1341_v56 }
 0x1b9   :  { %v749_v46 = vadd.f32 %v748_v3, %v659_v22 }
 0x1ba   :  { %936 = vst [vmem:[#allocation7 + $0x150] sm:$0xff] %v571_v54 }
 0x1bb   :  { %v838_v47 = vadd.f32 %v837_v36, %v749_v46 }
 0x1bc   :  { %v751_v9 = vpop.f32.mrf.mxu0  ;;  %v840_v40 = vpop.f32.mrf.mxu1 }
 0x1bd   :  { %937 = vst [vmem:[#allocation7 + $0x158] sm:$0xff] %v838_v47 }
 0x1bf   :  { %v573_v24 = vpop.f32.mrf.mxu2 }
 0x1c0   :  { %v662_v50 = vpop.f32.mrf.mxu3  ;;  %v574_v45 = vadd.f32 %v573_v24, %v1349_v30 }
 0x1c1   :  { %v752_v15 = vadd.f32 %v751_v9, %v662_v50 }
 0x1c2   :  { %938 = vst [vmem:[#allocation7 + $0x160] sm:$0xff] %v574_v45 }
 0x1c3   :  { %v841_v13 = vadd.f32 %v840_v40, %v752_v15 }
 0x1c4   :  { %v754_v28 = vpop.f32.mrf.mxu0  ;;  %v843_v25 = vpop.f32.mrf.mxu1 }
 0x1c5   :  { %939 = vst [vmem:[#allocation7 + $0x168] sm:$0xff] %v841_v13 }
 0x1c7   :  { %v576_v5 = vpop.f32.mrf.mxu2 }
 0x1c8   :  { %v665_v7 = vpop.f32.mrf.mxu3  ;;  %v577_v56 = vadd.f32 %v576_v5, %v1357_v2 }
 0x1c9   :  { %v755_v29 = vadd.f32 %v754_v28, %v665_v7 }
 0x1ca   :  { %940 = vst [vmem:[#allocation7 + $0x170] sm:$0xff] %v577_v56 }
 0x1cb   :  { %v844_v60 = vadd.f32 %v843_v25, %v755_v29 }
 0x1cd   :  { %941 = vst [vmem:[#allocation7 + $0x178] sm:$0xff] %v844_v60 }
 0x1ce   :  { %954 = dma.vmem_to_hbm [thread:$0]  %s947_s1, 6144, %s949_s25, [#allocation4], %s1084_s21, %s1084_s21, %s1085_s22  }
 0x1cf   :  { %1078 = dma.done.wait [#allocation4], 6144  }
 0x1d0   :  { %1079 = vsyncadd [#allocation4], 4294961152 }
 0x1d1   :  { %959 = vsyncpa [#allocation3], 1 }
 0x1d2   :  { %960 = vsyncpa [#allocation6], 1 }
 0x1d3   :  { %961 = vsyncpa [#allocation4], 1 }

</bundles_post_ra>
